<compile_context>
chip_gen: v5e
topology: v5e:2x2
jax: 0.10.0
libtpu: 0.0.40
codegen_flags: <defaults>
</compile_context>

<pallas_src>
import math

import jax
import jax.numpy as jnp
from jax.experimental import pallas as pl
from jax.experimental.pallas import tpu as pltpu


def _mlp_kernel(x_ref, w1_ref, b1_ref, w2_ref, b2_ref, wo_ref, bo_ref, o_ref):
    # hidden layer 1: MXU matmul + bias + tanh (EUP)
    h = jnp.dot(x_ref[...], w1_ref[...], preferred_element_type=jnp.float32)
    h = jnp.tanh(h + b1_ref[...])
    # hidden layer 2
    h = jnp.dot(h, w2_ref[...], preferred_element_type=jnp.float32)
    h = jnp.tanh(h + b2_ref[...])
    # output layer (nonlinearity_output=None -> linear), unpadded (tb, out_dim) store
    o = jnp.dot(h, wo_ref[...], preferred_element_type=jnp.float32)
    o_ref[...] = (o + bo_ref[...]).astype(o_ref.dtype)


def prepare_params(params):
    """One-time parameter prep: transpose PyTorch-style (out, in) weights to (in, out).

    Call this ONCE and reuse the result across forward calls (the transposes are separate
    XLA launches + HBM round-trips that would otherwise run on every call)."""
    w1, b1, w2, b2, wo, bo = params
    return (jnp.transpose(w1), b1, jnp.transpose(w2), b2, jnp.transpose(wo), bo)


def nn_controller_forward(x, prepared_params, *, block_batch=2048):
    """x: (batch, in_dim) f32.  prepared_params = prepare_params((w1, b1, w2, b2, wo, bo))."""
    w1t, b1, w2t, b2, wot, bo = prepared_params
    batch, in_dim = x.shape
    h1 = w1t.shape[1]
    h2 = w2t.shape[1]
    out_dim = wot.shape[1]

    # Batch tile: multiple of 8 (sublane rule), large enough to amortize grid-step overhead,
    # capped at 4096 so the double-buffered, lane-padded f32 tiles comfortably fit scoped VMEM
    # on every generation (incl. v7x's 64 MiB).
    bb = min(max(8, 8 * (block_batch // 8)), 4096)
    tb = min(bb, 8 * pl.cdiv(batch, 8))
    grid = (pl.cdiv(batch, tb),)  # partial edge block handled by Pallas masking

    const = lambda i: (0, 0)  # weights/biases: same block every grid step -> VMEM resident

    out = pl.pallas_call(
        _mlp_kernel,
        out_shape=jax.ShapeDtypeStruct((batch, out_dim), x.dtype),
        grid=grid,
        in_specs=[
            pl.BlockSpec((tb, in_dim), lambda i: (i, 0)),  # x: streamed over batch
            pl.BlockSpec((in_dim, h1), const),             # W1^T
            pl.BlockSpec((1, h1), const),                  # b1
            pl.BlockSpec((h1, h2), const),                 # W2^T
            pl.BlockSpec((1, h2), const),                  # b2
            pl.BlockSpec((h2, out_dim), const),            # Wout^T
            pl.BlockSpec((1, out_dim), const),             # bout
        ],
        out_specs=pl.BlockSpec((tb, out_dim), lambda i: (i, 0)),
        compiler_params=pltpu.CompilerParams(
            dimension_semantics=("parallel",),
        ),
    )(x, w1t, b1, w2t, b2, wot, bo)

    return out


def init_params(key, in_dim, layer_sizes, out_dim):
    """Deterministic PyTorch-Linear-style init: U(-1/sqrt(fan_in), 1/sqrt(fan_in))."""
    params = []
    prev = in_dim
    dims = list(layer_sizes) + [out_dim]
    for size in dims:
        key, kw, kb = jax.random.split(key, 3)
        bound = 1.0 / math.sqrt(prev)
        w = jax.random.uniform(kw, (size, prev), jnp.float32, -bound, bound)
        b = jax.random.uniform(kb, (1, size), jnp.float32, -bound, bound)
        params.extend([w, b])
        prev = size
    return tuple(params)


def reference_forward(x, params):
    w1, b1, w2, b2, wo, bo = params
    h = jnp.tanh(x @ w1.T + b1)
    h = jnp.tanh(h @ w2.T + b2)
    return h @ wo.T + bo


if __name__ == "__main__":
    # Small shapes consistent with the module: a controller mapping a low-dimensional
    # state to a low-dimensional action through 2 tanh hidden layers.
    batch, in_dim, out_dim = 8, 4, 2
    layer_sizes = [32, 32]

    key = jax.random.PRNGKey(0)
    key, kx, kx2 = jax.random.split(key, 3)
    x = jax.random.normal(kx, (batch, in_dim), dtype=jnp.float32)
    params = init_params(key, in_dim, layer_sizes, out_dim)
    prepared = prepare_params(params)  # one-time weight transposes, reused across calls

    out = nn_controller_forward(x, prepared)
    out = jax.block_until_ready(out)

    ref = reference_forward(x, params)
    assert out.shape == (batch, out_dim)
    assert jnp.allclose(out, ref, atol=1e-5, rtol=1e-5)

    # Extra check: batch that does not divide the tile -> partial edge block path.
    x2 = jax.random.normal(kx2, (37, in_dim), dtype=jnp.float32)
    out2 = jax.block_until_ready(nn_controller_forward(x2, prepared, block_batch=16))
    assert out2.shape == (37, out_dim)
    assert jnp.allclose(out2, reference_forward(x2, params), atol=1e-5, rtol=1e-5)

    print("KERNEL_OK")
</pallas_src>

<mosaic_0001>
module attributes {stable_mosaic.version = 11 : i64} {
  func.func @_mlp_kernel(%arg0: i32, %arg1: memref<8x4xf32, #tpu.memory_space<vmem>>, %arg2: memref<4x32xf32, #tpu.memory_space<vmem>>, %arg3: memref<1x32xf32, #tpu.memory_space<vmem>>, %arg4: memref<32x32xf32, #tpu.memory_space<vmem>>, %arg5: memref<1x32xf32, #tpu.memory_space<vmem>>, %arg6: memref<32x2xf32, #tpu.memory_space<vmem>>, %arg7: memref<1x2xf32, #tpu.memory_space<vmem>>, %arg8: memref<8x2xf32, #tpu.memory_space<vmem>>) attributes {dimension_semantics = [#tpu.dimension_semantics<parallel>], iteration_bounds = array<i64: 1>, scalar_prefetch = 0 : i64, scratch_operands = 0 : i64, tpu.core_type = #tpu.core_type<tc>, window_params = [{transform_indices = @transform_0, window_bounds = array<i64: 8, 4>}, {pipeline_mode = #tpu.pipeline_mode<synchronous>, transform_indices = @transform_1, window_bounds = array<i64: 4, 32>}, {pipeline_mode = #tpu.pipeline_mode<synchronous>, transform_indices = @transform_2, window_bounds = array<i64: 1, 32>}, {pipeline_mode = #tpu.pipeline_mode<synchronous>, transform_indices = @transform_3, window_bounds = array<i64: 32, 32>}, {pipeline_mode = #tpu.pipeline_mode<synchronous>, transform_indices = @transform_4, window_bounds = array<i64: 1, 32>}, {pipeline_mode = #tpu.pipeline_mode<synchronous>, transform_indices = @transform_5, window_bounds = array<i64: 32, 2>}, {pipeline_mode = #tpu.pipeline_mode<synchronous>, transform_indices = @transform_6, window_bounds = array<i64: 1, 2>}, {transform_indices = @transform_7, window_bounds = array<i64: 8, 2>}]} {
    %c0 = arith.constant 0 : index
    %c0_0 = arith.constant 0 : index
    %0 = vector.load %arg1[%c0, %c0_0] : memref<8x4xf32, #tpu.memory_space<vmem>>, vector<8x4xf32>
    %c0_1 = arith.constant 0 : index
    %c0_2 = arith.constant 0 : index
    %1 = vector.load %arg2[%c0_1, %c0_2] : memref<4x32xf32, #tpu.memory_space<vmem>>, vector<4x32xf32>
    %cst = arith.constant dense<0.000000e+00> : vector<8x32xf32>
    %2 = tpu.matmul %0, %1, %cst {dimension_numbers = #tpu.dot_dimension_numbers<[1], [0], [0], [1], [0, 0, 1, 1], [], []>} : vector<8x4xf32>, vector<4x32xf32>, vector<8x32xf32> -> vector<8x32xf32>
    %c0_3 = arith.constant 0 : index
    %c0_4 = arith.constant 0 : index
    %3 = vector.load %arg3[%c0_3, %c0_4] : memref<1x32xf32, #tpu.memory_space<vmem>>, vector<1x32xf32>
    %4 = vector.broadcast %3 : vector<1x32xf32> to vector<8x32xf32>
    %5 = arith.addf %2, %4 : vector<8x32xf32>
    %6 = math.tanh %5 : vector<8x32xf32>
    %c0_5 = arith.constant 0 : index
    %c0_6 = arith.constant 0 : index
    %7 = vector.load %arg4[%c0_5, %c0_6] : memref<32x32xf32, #tpu.memory_space<vmem>>, vector<32x32xf32>
    %cst_7 = arith.constant dense<0.000000e+00> : vector<8x32xf32>
    %8 = tpu.matmul %6, %7, %cst_7 {dimension_numbers = #tpu.dot_dimension_numbers<[1], [0], [0], [1], [0, 0, 1, 1], [], []>} : vector<8x32xf32>, vector<32x32xf32>, vector<8x32xf32> -> vector<8x32xf32>
    %c0_8 = arith.constant 0 : index
    %c0_9 = arith.constant 0 : index
    %9 = vector.load %arg5[%c0_8, %c0_9] : memref<1x32xf32, #tpu.memory_space<vmem>>, vector<1x32xf32>
    %10 = vector.broadcast %9 : vector<1x32xf32> to vector<8x32xf32>
    %11 = arith.addf %8, %10 : vector<8x32xf32>
    %12 = math.tanh %11 : vector<8x32xf32>
    %c0_10 = arith.constant 0 : index
    %c0_11 = arith.constant 0 : index
    %13 = vector.load %arg6[%c0_10, %c0_11] : memref<32x2xf32, #tpu.memory_space<vmem>>, vector<32x2xf32>
    %cst_12 = arith.constant dense<0.000000e+00> : vector<8x2xf32>
    %14 = tpu.matmul %12, %13, %cst_12 {dimension_numbers = #tpu.dot_dimension_numbers<[1], [0], [0], [1], [0, 0, 1, 1], [], []>} : vector<8x32xf32>, vector<32x2xf32>, vector<8x2xf32> -> vector<8x2xf32>
    %c0_13 = arith.constant 0 : index
    %c0_14 = arith.constant 0 : index
    %15 = vector.load %arg7[%c0_13, %c0_14] : memref<1x2xf32, #tpu.memory_space<vmem>>, vector<1x2xf32>
    %16 = vector.broadcast %15 : vector<1x2xf32> to vector<8x2xf32>
    %17 = arith.addf %14, %16 : vector<8x2xf32>
    %c0_15 = arith.constant 0 : index
    %c0_16 = arith.constant 0 : index
    %18 = vector.load %arg8[%c0_15, %c0_16] : memref<8x2xf32, #tpu.memory_space<vmem>>, vector<8x2xf32>
    tpu.vector_store %arg8[%c0_15, %c0_16], %17 {strides = array<i32>} : memref<8x2xf32, #tpu.memory_space<vmem>>, vector<8x2xf32>,
    return
  }
  func.func @transform_0(%arg0: i32) -> (i32, i32) {
    %c0_i32 = arith.constant 0 : i32
    %c0_i32_0 = arith.constant 0 : i32
    return %arg0, %c0_i32 : i32, i32
  }
  func.func @transform_1(%arg0: i32) -> (i32, i32) {
    %c0_i32 = arith.constant 0 : i32
    %c0_i32_0 = arith.constant 0 : i32
    %c0_i32_1 = arith.constant 0 : i32
    return %c0_i32, %c0_i32_0 : i32, i32
  }
  func.func @transform_2(%arg0: i32) -> (i32, i32) {
    %c0_i32 = arith.constant 0 : i32
    %c0_i32_0 = arith.constant 0 : i32
    %c0_i32_1 = arith.constant 0 : i32
    return %c0_i32, %c0_i32_0 : i32, i32
  }
  func.func @transform_3(%arg0: i32) -> (i32, i32) {
    %c0_i32 = arith.constant 0 : i32
    %c0_i32_0 = arith.constant 0 : i32
    %c0_i32_1 = arith.constant 0 : i32
    return %c0_i32, %c0_i32_0 : i32, i32
  }
  func.func @transform_4(%arg0: i32) -> (i32, i32) {
    %c0_i32 = arith.constant 0 : i32
    %c0_i32_0 = arith.constant 0 : i32
    %c0_i32_1 = arith.constant 0 : i32
    return %c0_i32, %c0_i32_0 : i32, i32
  }
  func.func @transform_5(%arg0: i32) -> (i32, i32) {
    %c0_i32 = arith.constant 0 : i32
    %c0_i32_0 = arith.constant 0 : i32
    %c0_i32_1 = arith.constant 0 : i32
    return %c0_i32, %c0_i32_0 : i32, i32
  }
  func.func @transform_6(%arg0: i32) -> (i32, i32) {
    %c0_i32 = arith.constant 0 : i32
    %c0_i32_0 = arith.constant 0 : i32
    %c0_i32_1 = arith.constant 0 : i32
    return %c0_i32, %c0_i32_0 : i32, i32
  }
  func.func @transform_7(%arg0: i32) -> (i32, i32) {
    %c0_i32 = arith.constant 0 : i32
    %c0_i32_0 = arith.constant 0 : i32
    return %arg0, %c0_i32 : i32, i32
  }
}

</mosaic_0001>

<bundles_post_ra>
// kernel: tpu_custom_call.1
= control target key start
LH: loop header
LB: loop body
LE: loop exit
PB: predicated region body
PF: predicated region fallthrough
CT: control target
= control target key end

     0   :  { %vm36_vm0 = vcmask 1043456   ;;  %vm32_vm1 = vcmask 31744   ;;  %vm69_vm2 = vcmask 261120   ;;  %vm125_vm3 = vcmask 15360   ;;  %s226_s1 = inlined_call_operand.vmem [shape: f32[4,32], index: 1, kind: input, shape index: {}]   ;;  %s227_s0 = inlined_call_operand.vmem [shape: f32[8,4], index: 0, kind: input, shape index: {}]   ;;  %s228_s2 = inlined_call_operand.vmem [shape: f32[1,32], index: 2, kind: input, shape index: {}]   ;;  %s229_s4 = inlined_call_operand.vmem [shape: f32[1,32], index: 4, kind: input, shape index: {}]   ;;  %s230_s3 = inlined_call_operand.vmem [shape: f32[32,32], index: 3, kind: input, shape index: {}]   ;;  %s231_s6 = inlined_call_operand.vmem [shape: f32[1,2], index: 6, kind: input, shape index: {}]   ;;  %s232_s5 = inlined_call_operand.vmem [shape: f32[32,2], index: 5, kind: input, shape index: {}]   ;;  %s233_s7 = inlined_call_operand.vmem [shape: f32[8,2], index: 7, kind: output, shape index: {}]  }
   0x1   :  { %v27_v0 = vld [vmem:[%s226_s1] sm:$0xf]  ;;  %v64_v2 = vld [vmem:[%s230_s3 + $0x18] sm:$0xff]  ;;  %v63_v3 = vld [vmem:[%s230_s3 + $0x10] sm:$0xff] }
   0x2   :  { %v26_v1 = vld [vmem:[%s227_s0] sm:$0xff]  ;;  %131 = vmatpush.msk.msra.mxu0 %vm36_vm0, %v27_v0  ;;  %85 = vmatpush.msra.mxu1 %v64_v2  ;;  %v62_v4 = vld [vmem:[%s230_s3 + $0x8] sm:$0xff]  ;;  %v97_v10 = vld [vmem:[%s232_s5 + $0x18] sm:$0xff] }
   0x3   :  { %132 = vmatmul.msk.f32.vlgmr.msra.gmra.mxu0 %vm32_vm1, %v26_v1  ;;  %v61_v5 = vld [vmem:[%s230_s3] sm:$0xff]  ;;  %117 = vmatpush.msra.mxu2 %v97_v10  ;;  %v96_v11 = vld [vmem:[%s232_s5 + $0x10] sm:$0xff]  ;;  %v95_v12 = vld [vmem:[%s232_s5 + $0x8] sm:$0xff] }
   0x4   :  { %86 = vmatpush.msra.mxu1 %v63_v3  ;;  %v135_v6 = vld [vmem:[%s228_s2] ss:$0 sm:$0xff] }
   0x5   :  { %118 = vmatpush.msra.mxu2 %v96_v11  ;;  %v94_v13 = vld [vmem:[%s232_s5] sm:$0xff] }
   0x6   :  { %87 = vmatpush.msra.mxu1 %v62_v4  ;;  %v136_v14 = vld [vmem:[%s229_s4] ss:$0 sm:$0xff] }
   0x7   :  { %119 = vmatpush.msra.mxu2 %v95_v12  ;;  %v137_v18 = vld [vmem:[%s231_s6] ss:$0 sm:$0xff] }
   0x8   :  { %88 = vmatpush.msra.mxu1 %v61_v5 }
   0x9   :  { %120 = vmatpush.msra.mxu2 %v94_v13 }
  0x80   :  { %v57_v7 = vpop.f32.mrf.mxu0 }
  0x81   :  { %v58_v8 = vadd.f32 %v135_v6, %v57_v7 }
  0x83   :  { %138 = vtanh.f32 %v58_v8 }
  0x89   :  { %v139_v9 = vpop.eup %138 }
  0x8a   :  { %133 = vmatmul.msk.f32.vlgmr.msra.gmra.mxu1 %vm69_vm2, %v139_v9 }
 0x107   :  { %v90_v15 = vpop.f32.mrf.mxu1 }
 0x108   :  { %v91_v16 = vadd.f32 %v136_v14, %v90_v15 }
 0x10a   :  { %140 = vtanh.f32 %v91_v16 }
 0x110   :  { %v141_v17 = vpop.eup %140 }
 0x111   :  { %134 = vmatmul.msk.f32.vlgmr.msra.gmra.mxu2 %vm69_vm2, %v141_v17 }
 0x194   :  { %v122_v19 = vpop.f32.mrf.mxu2 }
 0x195   :  { %v123_v20 = vadd.f32 %v137_v18, %v122_v19 }
 0x197   :  { %126 = vst.msk [vmem:[%s233_s7] sm:$0xff] %vm125_vm3, %v123_v20 }

</bundles_post_ra>
